<compile_context>
chip_gen: v6e
topology: v6e:2x2x1
jax: 0.10.0
libtpu: 0.0.40
codegen_flags: <defaults>
</compile_context>

<pallas_src>
import functools

import jax
import jax.numpy as jnp
from jax import lax
from jax.experimental import pallas as pl
from jax.experimental.pallas import tpu as pltpu


def _round_up(x, m):
    return (x + m - 1) // m * m


def sessconv_kernel(inv_layers_p1, ids_ref, emb_hbm_ref, slen_ref, da_ref, w_ref,
                    out_ref, emb_vmem, acc_ref, out_sum_ref, copy_sem):
    """One grid step == one propagation layer.

    ids_ref   : SMEM (B_pad, S)        int32  scalar-prefetched session item ids (0 = pad)
    emb_hbm   : ANY  (V_pad, E_pad)    f32    zero-padded item embedding table (row 0 = pad)
    slen_ref  : VMEM (B_pad, 1)        f32    session lengths
    da_ref    : VMEM (B_pad, B_pad)    bf16   DA = D @ A (precomputed in wrapper)
    w_ref     : VMEM (1, E_pad, E_pad) bf16   this layer's Linear weight, already [in, out]
    out_ref   : VMEM (B_pad, E_pad)    f32
    scratch   : emb_vmem (resident table copy), acc_ref (current session_emb),
                out_sum_ref (running sum of terms), copy_sem (DMA semaphore)
    """
    layer = pl.program_id(0)
    b_pad, seq_len = ids_ref.shape
    e_pad = acc_ref.shape[-1]

    # ---------- layer 0: bring table to VMEM once, gather + mean-pool ----------
    @pl.when(layer == 0)
    def _init():
        # One-shot HBM -> VMEM copy of the (small) embedding table.
        # TODO(synk): for very large vocabularies replace the resident table with
        # per-row pltpu.make_async_copy gathers straight from HBM.
        cp = pltpu.make_async_copy(emb_hbm_ref, emb_vmem, copy_sem)
        cp.start()
        cp.wait()

        def pool_row(b, carry):
            def add_item(t, row):
                idx = ids_ref[b, t]                       # pad id 0 hits the zero row
                return row + emb_vmem[pl.ds(idx, 1), :]
            row = lax.fori_loop(0, seq_len, add_item,
                                jnp.zeros((1, e_pad), jnp.float32))
            acc_ref[pl.ds(b, 1), :] = row
            return carry

        lax.fori_loop(0, b_pad, pool_row, 0)

        inv_len = pl.reciprocal(slen_ref[...], approx=True)   # EUP, (B_pad, 1)
        sess0 = acc_ref[...] * inv_len                        # mean pooling
        acc_ref[...] = sess0
        out_sum_ref[...] = sess0

    # ---------- every step: Linear -> DA propagation -> add L2-normalized copy --
    w = w_ref[0]                                               # (E_pad, E_pad) bf16, [in, out]
    x = jnp.dot(acc_ref[...].astype(jnp.bfloat16), w,
                preferred_element_type=jnp.float32)            # nn.Linear (bias=False)
    new_acc = jnp.dot(da_ref[...], x.astype(jnp.bfloat16),
                      preferred_element_type=jnp.float32)      # DA @ x
    acc_ref[...] = new_acc                                     # propagate UN-normalized

    sq = jnp.sum(new_acc * new_acc, axis=-1, keepdims=True)
    inv_norm = lax.rsqrt(jnp.maximum(sq, 1e-24))               # == 1 / max(||x||, 1e-12)
    out_sum_ref[...] = out_sum_ref[...] + new_acc * inv_norm   # F.normalize(p=2, dim=-1)

    # ---------- last layer: average over (layers + 1) terms and emit -----------
    @pl.when(layer == pl.num_programs(0) - 1)
    def _finalize():
        out_ref[...] = out_sum_ref[...] * inv_layers_p1


def sessconv_forward(item_embedding, D, A, session_item, session_len, weights):
    """SessConv.forward.

    item_embedding: [n_items, E]   (an all-zero padding row is prepended internally)
    D, A:           [B, B]
    session_item:   [B, S] int ids into the zero-padded table (0 = padding)
    session_len:    [B] or [B, 1]
    weights:        [L, E, E] in PyTorch nn.Linear layout (out, in), bias-free
    returns:        [B, E] float32
    """
    n_items, emb = item_embedding.shape
    batch, seq = session_item.shape
    layers = weights.shape[0]
    assert layers >= 1

    e_pad = _round_up(max(emb, 128), 128)     # lane-dense (multiple of 128)
    b_pad = _round_up(batch, 8)               # sublane-dense
    vocab = n_items + 1
    v_pad = _round_up(vocab, 8)

    # Zero-padded embedding table (row 0 = padding). Kept f32 for the dynamic-row gather.
    emb_tbl = jnp.zeros((v_pad, e_pad), jnp.float32)
    emb_tbl = emb_tbl.at[1:vocab, :emb].set(item_embedding.astype(jnp.float32))

    ids = jnp.zeros((b_pad, seq), jnp.int32)
    ids = ids.at[:batch].set(session_item.astype(jnp.int32))

    slen = jnp.ones((b_pad, 1), jnp.float32)
    slen = slen.at[:batch].set(session_len.astype(jnp.float32).reshape(batch, 1))

    # Fold D into A once on the XLA side (== torch.mm(D, A)); kernel never sees D/A.
    da = jnp.matmul(D.astype(jnp.float32), A.astype(jnp.float32))
    da_p = jnp.zeros((b_pad, b_pad), jnp.bfloat16)
    da_p = da_p.at[:batch, :batch].set(da.astype(jnp.bfloat16))

    # Pre-transpose Linear weights to [in, out] so the kernel does acc @ W (no .T).
    w_t = jnp.transpose(weights.astype(jnp.float32), (0, 2, 1))
    w_p = jnp.zeros((layers, e_pad, e_pad), jnp.bfloat16)
    w_p = w_p.at[:, :emb, :emb].set(w_t.astype(jnp.bfloat16))

    kernel = functools.partial(sessconv_kernel, 1.0 / (layers + 1))

    out = pl.pallas_call(
        kernel,
        out_shape=jax.ShapeDtypeStruct((b_pad, e_pad), jnp.float32),
        grid_spec=pltpu.PrefetchScalarGridSpec(
            num_scalar_prefetch=1,                     # session_item ids -> SMEM
            grid=(layers,),                            # layer loop on the grid (pipelines W DMA)
            in_specs=[
                pl.BlockSpec(memory_space=pl.ANY),                          # emb table (HBM)
                pl.BlockSpec((b_pad, 1), lambda l, ids: (0, 0)),            # session_len
                pl.BlockSpec((b_pad, b_pad), lambda l, ids: (0, 0)),        # DA
                pl.BlockSpec((1, e_pad, e_pad), lambda l, ids: (l, 0, 0)),  # layer weight
            ],
            out_specs=pl.BlockSpec((b_pad, e_pad), lambda l, ids: (0, 0)),
            scratch_shapes=[
                pltpu.VMEM((v_pad, e_pad), jnp.float32),   # resident embedding table
                pltpu.VMEM((b_pad, e_pad), jnp.float32),   # acc (current session_emb)
                pltpu.VMEM((b_pad, e_pad), jnp.float32),   # running output sum
                pltpu.SemaphoreType.DMA(()),               # table-copy semaphore
            ],
        ),
        compiler_params=pltpu.CompilerParams(
            dimension_semantics=("arbitrary",),            # layer axis is a serial chain
            vmem_limit_bytes=48 * 1024 * 1024,             # explicit budget, fits v7x 64 MiB
        ),
    )(ids, emb_tbl, slen, da_p, w_p)

    return out[:batch, :emb]


def sessconv_reference(item_embedding, D, A, session_item, session_len, weights):
    """Pure-JAX f32 port of SessConv.forward (for correctness checking only)."""
    emb = jnp.concatenate(
        [jnp.zeros((1, item_embedding.shape[1]), item_embedding.dtype), item_embedding], 0)
    seq_h = emb[session_item]                                    # [B, S, E] gather
    sess = jnp.sum(seq_h, axis=1) / session_len.reshape(-1, 1)   # mean pooling
    da = D @ A
    total = sess
    cur = sess
    for i in range(weights.shape[0]):
        cur = cur @ weights[i].T                                 # nn.Linear, bias=False
        cur = da @ cur                                           # DA propagation
        nrm = jnp.maximum(jnp.sqrt(jnp.sum(cur * cur, -1, keepdims=True)), 1e-12)
        total = total + cur / nrm                                # F.normalize(p=2, dim=-1)
    return total / (weights.shape[0] + 1)


if __name__ == "__main__":
    key = jax.random.PRNGKey(0)
    n_items, emb_size = 32, 32
    batch, seq_len, layers = 8, 8, 2

    k1, k2, k3, k4 = jax.random.split(key, 4)

    item_embedding = jax.random.normal(k1, (n_items, emb_size), jnp.float32)
    # item ids in [0, n_items]; 0 means padding (maps to the all-zero row)
    session_item = jax.random.randint(k2, (batch, seq_len), 0, n_items + 1).astype(jnp.int32)
    session_len = jnp.maximum(
        jnp.sum((session_item > 0).astype(jnp.float32), axis=1), 1.0)

    A = jax.random.uniform(k3, (batch, batch), jnp.float32)
    D = jnp.diag(1.0 / jnp.sum(A, axis=1))  # degree-normalization diagonal

    # deterministic stand-in for the nn.Linear(emb, emb, bias=False) weights (PyTorch [out, in])
    weights = 0.1 * jax.random.normal(k4, (layers, emb_size, emb_size), jnp.float32)

    out = sessconv_forward(item_embedding, D, A, session_item, session_len, weights)
    jax.block_until_ready(out)
    assert out.shape == (batch, emb_size)
    assert bool(jnp.all(jnp.isfinite(out)))

    ref = sessconv_reference(item_embedding, D, A, session_item, session_len, weights)
    max_err = float(jnp.max(jnp.abs(out - ref)))
    assert max_err < 5e-2, f"max abs error vs reference: {max_err}"

    print("KERNEL_OK")
</pallas_src>

<mosaic_0001>
module attributes {stable_mosaic.version = 11 : i64} {
  func.func @sessconv_kernel(%arg0: i32, %arg1: memref<8x8xi32, #tpu.memory_space<smem>>, %arg2: memref<40x128xf32, #tpu.memory_space<any>>, %arg3: memref<8x1xf32, #tpu.memory_space<vmem>>, %arg4: memref<8x8xbf16, #tpu.memory_space<vmem>>, %arg5: memref<1x128x128xbf16, #tpu.memory_space<vmem>>, %arg6: memref<8x128xf32, #tpu.memory_space<vmem>>, %arg7: memref<40x128xf32, #tpu.memory_space<vmem>>, %arg8: memref<8x128xf32, #tpu.memory_space<vmem>>, %arg9: memref<8x128xf32, #tpu.memory_space<vmem>>, %arg10: memref<!tpu.dma_semaphore, #tpu.memory_space<semaphore_mem>>) attributes {dimension_semantics = [#tpu.dimension_semantics<arbitrary>], iteration_bounds = array<i64: 2>, scalar_prefetch = 1 : i64, scratch_operands = 4 : i64, tpu.core_type = #tpu.core_type<tc>, window_params = [{}, {pipeline_mode = #tpu.pipeline_mode<synchronous>, transform_indices = @transform_1, window_bounds = array<i64: 8, 1>}, {pipeline_mode = #tpu.pipeline_mode<synchronous>, transform_indices = @transform_2, window_bounds = array<i64: 8, 8>}, {transform_indices = @transform_3, window_bounds = array<i64: 1, 128, 128>}, {pipeline_mode = #tpu.pipeline_mode<synchronous>, transform_indices = @transform_4, window_bounds = array<i64: 8, 128>}]} {
    %c0_i32 = arith.constant 0 : i32
    %0 = arith.cmpi eq, %arg0, %c0_i32 : i32
    %1 = arith.extui %0 : i1 to i32
    %c0_i32_0 = arith.constant 0 : i32
    %2 = arith.cmpi ne, %1, %c0_i32_0 : i32
    scf.if %2 {
      tpu.enqueue_dma source(%arg2 : memref<40x128xf32, #tpu.memory_space<any>>) target(%arg7 : memref<40x128xf32, #tpu.memory_space<vmem>>) target_semaphore(%arg10 : memref<!tpu.dma_semaphore, #tpu.memory_space<semaphore_mem>>)
      tpu.wait_dma2 semaphore(%arg10 : memref<!tpu.dma_semaphore, #tpu.memory_space<semaphore_mem>>) src(%arg2 : memref<40x128xf32, #tpu.memory_space<any>>) dst(%arg7 : memref<40x128xf32, #tpu.memory_space<vmem>>)
      %c0_i32_17 = arith.constant 0 : i32
      %c8_i32 = arith.constant 8 : i32
      %26 = arith.addi %c0_i32_17, %c8_i32 : i32
      %c1_i32_18 = arith.constant 1 : i32
      scf.for %arg11 = %c0_i32_17 to %26 step %c1_i32_18  : i32 {
        %cst_28 = arith.constant 0.000000e+00 : f32
        %34 = vector.broadcast %cst_28 : f32 to vector<1x128xf32>
        %c0_i32_29 = arith.constant 0 : i32
        %c8_i32_30 = arith.constant 8 : i32
        %35 = arith.addi %c0_i32_29, %c8_i32_30 : i32
        %c1_i32_31 = arith.constant 1 : i32
        %36 = scf.for %arg12 = %c0_i32_29 to %35 step %c1_i32_31 iter_args(%arg13 = %34) -> (vector<1x128xf32>)  : i32 {
          %39 = arith.index_cast %arg11 : i32 to index
          %40 = arith.index_cast %arg12 : i32 to index
          %41 = memref.load %arg1[%39, %40] : memref<8x8xi32, #tpu.memory_space<smem>>
          %42 = arith.index_cast %41 : i32 to index
          %c0_34 = arith.constant 0 : index
          %43 = vector.load %arg7[%42, %c0_34] : memref<40x128xf32, #tpu.memory_space<vmem>>, vector<1x128xf32>
          %44 = arith.addf %arg13, %43 : vector<1x128xf32>
          scf.yield %44 : vector<1x128xf32>
        }
        %c8_i32_32 = arith.constant 8 : i32
        %37 = arith.index_cast %arg11 : i32 to index
        %c0_33 = arith.constant 0 : index
        %38 = vector.load %arg8[%37, %c0_33] : memref<8x128xf32, #tpu.memory_space<vmem>>, vector<1x128xf32>
        tpu.vector_store %arg8[%37, %c0_33], %36 {strides = array<i32>} : memref<8x128xf32, #tpu.memory_space<vmem>>, vector<1x128xf32>,
      }
      %c8_i32_19 = arith.constant 8 : i32
      %c0_20 = arith.constant 0 : index
      %c0_21 = arith.constant 0 : index
      %27 = vector.load %arg3[%c0_20, %c0_21] : memref<8x1xf32, #tpu.memory_space<vmem>>, vector<8x1xf32>
      %28 = tpu.reciprocal %27 {approx = true} : vector<8x1xf32> -> vector<8x1xf32>
      %c0_22 = arith.constant 0 : index
      %c0_23 = arith.constant 0 : index
      %29 = vector.load %arg8[%c0_22, %c0_23] : memref<8x128xf32, #tpu.memory_space<vmem>>, vector<8x128xf32>
      %30 = vector.broadcast %28 : vector<8x1xf32> to vector<8x128xf32>
      %31 = arith.mulf %29, %30 : vector<8x128xf32>
      %c0_24 = arith.constant 0 : index
      %c0_25 = arith.constant 0 : index
      %32 = vector.load %arg8[%c0_24, %c0_25] : memref<8x128xf32, #tpu.memory_space<vmem>>, vector<8x128xf32>
      tpu.vector_store %arg8[%c0_24, %c0_25], %31 {strides = array<i32>} : memref<8x128xf32, #tpu.memory_space<vmem>>, vector<8x128xf32>,
      %c0_26 = arith.constant 0 : index
      %c0_27 = arith.constant 0 : index
      %33 = vector.load %arg9[%c0_26, %c0_27] : memref<8x128xf32, #tpu.memory_space<vmem>>, vector<8x128xf32>
      tpu.vector_store %arg9[%c0_26, %c0_27], %31 {strides = array<i32>} : memref<8x128xf32, #tpu.memory_space<vmem>>, vector<8x128xf32>,
    } else {
    }
    %c0 = arith.constant 0 : index
    %c0_1 = arith.constant 0 : index
    %c0_2 = arith.constant 0 : index
    %3 = vector.load %arg5[%c0, %c0_1, %c0_2] : memref<1x128x128xbf16, #tpu.memory_space<vmem>>, vector<1x128x128xbf16>
    %4 = vector.shape_cast %3 : vector<1x128x128xbf16> to vector<128x128xbf16>
    %c0_3 = arith.constant 0 : index
    %c0_4 = arith.constant 0 : index
    %5 = vector.load %arg8[%c0_3, %c0_4] : memref<8x128xf32, #tpu.memory_space<vmem>>, vector<8x128xf32>
    %6 = arith.truncf %5 : vector<8x128xf32> to vector<8x128xbf16>
    %cst = arith.constant dense<0.000000e+00> : vector<8x128xf32>
    %7 = tpu.matmul %6, %4, %cst {dimension_numbers = #tpu.dot_dimension_numbers<[1], [0], [0], [1], [0, 0, 1, 1], [], []>} : vector<8x128xbf16>, vector<128x128xbf16>, vector<8x128xf32> -> vector<8x128xf32>
    %c0_5 = arith.constant 0 : index
    %c0_6 = arith.constant 0 : index
    %8 = vector.load %arg4[%c0_5, %c0_6] : memref<8x8xbf16, #tpu.memory_space<vmem>>, vector<8x8xbf16>
    %9 = arith.truncf %7 : vector<8x128xf32> to vector<8x128xbf16>
    %cst_7 = arith.constant dense<0.000000e+00> : vector<8x128xf32>
    %10 = tpu.matmul %8, %9, %cst_7 {dimension_numbers = #tpu.dot_dimension_numbers<[1], [0], [0], [1], [0, 0, 1, 1], [], []>} : vector<8x8xbf16>, vector<8x128xbf16>, vector<8x128xf32> -> vector<8x128xf32>
    %c0_8 = arith.constant 0 : index
    %c0_9 = arith.constant 0 : index
    %11 = vector.load %arg8[%c0_8, %c0_9] : memref<8x128xf32, #tpu.memory_space<vmem>>, vector<8x128xf32>
    tpu.vector_store %arg8[%c0_8, %c0_9], %10 {strides = array<i32>} : memref<8x128xf32, #tpu.memory_space<vmem>>, vector<8x128xf32>,
    %12 = arith.mulf %10, %10 : vector<8x128xf32>
    %cst_10 = arith.constant dense<0.000000e+00> : vector<8xf32>
    %13 = vector.multi_reduction <add>, %12, %cst_10 [1] : vector<8x128xf32> to vector<8xf32>
    %14 = vector.shape_cast %13 : vector<8xf32> to vector<8x1xf32>
    %cst_11 = arith.constant 1.000000e-24 : f32
    %15 = vector.broadcast %cst_11 : f32 to vector<8x1xf32>
    %16 = arith.maximumf %14, %15 : vector<8x1xf32>
    %17 = math.rsqrt %16 : vector<8x1xf32>
    %c0_12 = arith.constant 0 : index
    %c0_13 = arith.constant 0 : index
    %18 = vector.load %arg9[%c0_12, %c0_13] : memref<8x128xf32, #tpu.memory_space<vmem>>, vector<8x128xf32>
    %19 = vector.broadcast %17 : vector<8x1xf32> to vector<8x128xf32>
    %20 = arith.mulf %10, %19 : vector<8x128xf32>
    %21 = arith.addf %18, %20 : vector<8x128xf32>
    %c0_14 = arith.constant 0 : index
    %c0_15 = arith.constant 0 : index
    %22 = vector.load %arg9[%c0_14, %c0_15] : memref<8x128xf32, #tpu.memory_space<vmem>>, vector<8x128xf32>
    tpu.vector_store %arg9[%c0_14, %c0_15], %21 {strides = array<i32>} : memref<8x128xf32, #tpu.memory_space<vmem>>, vector<8x128xf32>,
    %c1_i32 = arith.constant 1 : i32
    %23 = arith.cmpi eq, %arg0, %c1_i32 : i32
    %24 = arith.extui %23 : i1 to i32
    %c0_i32_16 = arith.constant 0 : i32
    %25 = arith.cmpi ne, %24, %c0_i32_16 : i32
    scf.if %25 {
      %c0_17 = arith.constant 0 : index
      %c0_18 = arith.constant 0 : index
      %26 = vector.load %arg9[%c0_17, %c0_18] : memref<8x128xf32, #tpu.memory_space<vmem>>, vector<8x128xf32>
      %cst_19 = arith.constant 0.333333343 : f32
      %27 = vector.broadcast %cst_19 : f32 to vector<8x128xf32>
      %28 = arith.mulf %26, %27 : vector<8x128xf32>
      %c0_20 = arith.constant 0 : index
      %c0_21 = arith.constant 0 : index
      %29 = vector.load %arg6[%c0_20, %c0_21] : memref<8x128xf32, #tpu.memory_space<vmem>>, vector<8x128xf32>
      tpu.vector_store %arg6[%c0_20, %c0_21], %28 {strides = array<i32>} : memref<8x128xf32, #tpu.memory_space<vmem>>, vector<8x128xf32>,
    } else {
    }
    return
  }
  func.func @transform_1(%arg0: i32, %arg1: memref<8x8xi32, #tpu.memory_space<smem>>) -> (i32, i32) {
    %c0_i32 = arith.constant 0 : i32
    %c0_i32_0 = arith.constant 0 : i32
    %c0_i32_1 = arith.constant 0 : i32
    return %c0_i32, %c0_i32_0 : i32, i32
  }
  func.func @transform_2(%arg0: i32, %arg1: memref<8x8xi32, #tpu.memory_space<smem>>) -> (i32, i32) {
    %c0_i32 = arith.constant 0 : i32
    %c0_i32_0 = arith.constant 0 : i32
    %c0_i32_1 = arith.constant 0 : i32
    return %c0_i32, %c0_i32_0 : i32, i32
  }
  func.func @transform_3(%arg0: i32, %arg1: memref<8x8xi32, #tpu.memory_space<smem>>) -> (i32, i32, i32) {
    %c0_i32 = arith.constant 0 : i32
    %c0_i32_0 = arith.constant 0 : i32
    %c0_i32_1 = arith.constant 0 : i32
    return %arg0, %c0_i32, %c0_i32_0 : i32, i32, i32
  }
  func.func @transform_4(%arg0: i32, %arg1: memref<8x8xi32, #tpu.memory_space<smem>>) -> (i32, i32) {
    %c0_i32 = arith.constant 0 : i32
    %c0_i32_0 = arith.constant 0 : i32
    %c0_i32_1 = arith.constant 0 : i32
    return %c0_i32, %c0_i32_0 : i32, i32
  }
}

</mosaic_0001>

<bundles_post_ra>
// kernel: tpu_custom_call.1
= control target key start
LH: loop header
LB: loop body
LE: loop exit
PB: predicated region body
PF: predicated region fallthrough
CT: control target
= control target key end

     0   :  { %s968_s0 = inlined_call_operand.vmem [shape: s32[8,8], index: 0, kind: input, shape index: {}]   ;;  %s969_s1 = inlined_call_operand.hbm [shape: f32[40,128], index: 1, kind: input, shape index: {}]   ;;  %s970_s2 = inlined_call_operand.vmem [shape: f32[8,1], index: 2, kind: input, shape index: {}]   ;;  %s971_s3 = inlined_call_operand.vmem [shape: bf16[8,8], index: 3, kind: input, shape index: {}]   ;;  %s972_s4 = inlined_call_operand.hbm [shape: bf16[2,128,128], index: 4, kind: input, shape index: {}]   ;;  %s973_s5 = inlined_call_operand.hbm [shape: f32[8,128], index: 5, kind: output, shape index: {}]  }
   0x1   :  { %s10_s20 = sshll.u32 %s968_s0, 4  ;;  %s11_s20 = int_to_ptr.vmem [resolvable:$true] %s10_s20 }
   0x2   :  { %s645_s21 = scalar_lea.vmem %s11_s20, 128  ;;  %p650_p1 = scmp.lt.s32.totalorder %s11_s20, %s11_s20 }
   0x3   :  { %p646_p0 = scmp.ne.s32.totalorder %s11_s20, %s645_s21  ;;  %p651_p2 = scmp.lt.s32.totalorder %s645_s21, %s645_s21 }
   0x5   :  { %p652_p3 = por %p651_p2, %p650_p1 }
   0x7   :  { %p653_p4 = pnand %p652_p3, %p646_p0 }
   0x9   :  { %656 = shalt.err (!%p653_p4)  }
   0xa   :  { %s797_s22 = smov [#allocation7]  }
   0xb   :  { %13 = dma.vmem_to_smem %s11_s20, 128, %s797_s22, [#allocation6] }
   0xc   :  { %757 = dma.done.wait [#allocation6], 128 }
   0xd   :  { %758 = vsyncadd [#allocation6], 4294967168 }
   0xe   :  { %15 = sfence }
   0xf   :  { %16 = vsyncpa [#allocation9], 0 }
  0x10   :  { %18 = vsyncpa [#allocation9 + $0x1], 0 }
  0x11   :  { %19 = vsyncpa [#allocation10], 0  ;;  %s839_s23 = smov 0   ;;  %s841_s24 = smov 0  }
  0x12   :  { %s843_s0 = smov 0   ;;  %s845_s25 = smov 0  }
  0x13 LB: > { %s858_s26 = sadd.s32 4294967295, %s783_s25   ;;  %s861_s27 = sadd.s32 1, %s783_s25   ;;  %s783_s25 = sphi %s845_s25, %s982_s25   ;;  %s779_s0 = sphi %s843_s0, %s981_s0   ;;  %s775_s24 = sphi %s841_s24, %s980_s24   ;;  %s771_s23 = sphi %s839_s23, %s979_s23  }
  0x14   : > { %s71_s28 = ssub.s32 %s783_s25, %s861_s27  ;;  %s74_s29 = sadd.s32 1, %s779_s0 }
  0x15   : > { %p72_p5 = scmp.eq.s32.totalorder %s71_s28, 0  ;;  %p81_p6 = scmp.ne.s32.totalorder %s779_s0, %s775_s24 }
  0x16   : > { %p82_p7 = scmp.eq.s32.totalorder %s783_s25, 0  ;;  %p87_p8 = scmp.ne.s32.totalorder %s775_s24, %s771_s23 }
  0x17   : > { %s871_s30 = scalar_select %p72_p5, %s779_s0, %s74_s29  }
  0x18   : > { %p83_p9 = por %p82_p7, %p81_p6  ;;  %p88_p10 = scmp.eq.s32.totalorder %s858_s26, 0 }
  0x19   : > { %p565_p11 = scmp.lt.s32.totalorder %s783_s25, 2  ;;  %s138_s7 = sand.u32 1, %s779_s0  }
  0x1a   : > { %p875_p12 = por %p88_p10, %p87_p8  ;;  %s495_s8 = sshll.u32 %s138_s7, 6 }
  0x1b   : > { %s517_s9 = sshll.u32 %s783_s25, 10  ;;  %s142_s13 = scalar_lea.vmem [#allocation8], %s495_s8 }
  0x1c   : > { %s975_s6 = scalar_select %p875_p12, 1, 0 }
  0x1d   : > { %s884_s12 = scalar_lea.hbm %s972_s4, %s517_s9  ;;  %s149_s14 = sshll.u32 %s142_s13, 4  ;;  %s886_s14 = int_to_ptr.vmem [resolvable:$true] %s149_s14 }
  0x1e   : > { %p888_p13 = pnand %p565_p11, %p83_p9  ;;  %s893_s16 = scalar_lea.sflag [#allocation9], %s138_s7 }
  0x1f   : > { %s657_s17 = scalar_lea.hbm %s884_s12, 1024  ;;  %s662_s20 = scalar_lea.hbm %s972_s4, 2048 }
  0x20   : > { %p658_p1 = scmp.ne.s32.totalorder %s884_s12, %s657_s17  ;;  %p659_p2 = pneg %p888_p13 }
  0x21   : > { %p663_p5 = scmp.lt.s32.totalorder %s884_s12, %s972_s4  ;;  %p664_p6 = scmp.lt.s32.totalorder %s662_s20, %s657_s17 }
  0x22   : > { %p660_p3 = pnand %p659_p2, %p658_p1 }
  0x23   : > { %p665_p7 = por %p664_p6, %p663_p5 }
  0x24   : > { %p661_p4 = pneg %p660_p3 }
  0x26   : > { %p666_p8 = pnand %p665_p7, %p661_p4 }
  0x28   : > { %669 = shalt.err (!%p666_p8)
}
  0x29   : > { %s670_s23 = scalar_lea.vmem %s886_s14, 1024  ;;  %s798_s28 = smov [#allocation8]  }
  0x2a   : > { %p671_p9 = scmp.ne.s32.totalorder %s886_s14, %s670_s23  ;;  %s675_s29 = sshll.u32 %s798_s28, 4  ;;  %s676_s29 = int_to_ptr.vmem [resolvable:$false] %s675_s29 }
  0x2b   : > { %s677_s7 = scalar_lea.vmem %s676_s29, 2048  ;;  %p678_p1 = scmp.lt.s32.totalorder %s886_s14, %s676_s29 }
  0x2c   : > { %p673_p10 = pnand %p671_p9, %p659_p2  ;;  %p679_p3 = scmp.lt.s32.totalorder %s677_s7, %s670_s23 }
  0x2e   : > { %p674_p11 = pneg %p673_p10  ;;  %p680_p0 = por %p679_p3, %p678_p1 }
  0x30   : > { %p681_p12 = pnand %p680_p0, %p674_p11 }
  0x32   : > { %684 = shalt.err (!%p681_p12)
}
  0x33   : > { %s799_s8 = smov 64   ;;  %s800_s9 = smov 4  }
  0x34   : > { %564 = dma.hbm_to_vmem [thread:$0]  (!%p888_p13), %s884_s12, 1024, %s886_s14, %s893_s16, %s799_s8, %s799_s8, %s800_s9  }
  0x35   : > { %p157_p2 = scmp.lt.s32.totalorder %s783_s25, 3  ;;  %p977_p4 = scmp.ge.s32.totalorder %s783_s25, 1 }
  0x37   : > { %p158_p5 = pnand %p977_p4, %p157_p2 }
  0x38   : > { %s163_s10 = sand.u32 (!%p158_p5), 1, %s775_s24   ;;  %p978_p12 = scmp.ne.s32.totalorder (!%p158_p5), %s975_s6, 0 }
  0x39   : > { %161 = sbr.rel (%p158_p5) target bundleno = 846 (0x34e), region = 32  ;;  %s499_s11 = sshll.u32 (!%p158_p5), %s163_s10, 6 }
  0x3a   : > { %s164_s13 = scalar_lea.sflag (!%p158_p5), [#allocation9], %s163_s10  ;;  %s918_s17 = scalar_lea.vmem (!%p158_p5), [#allocation8], %s499_s11 }
  0x3e   : > { %760 = dma.done.wait (%p978_p12), %s164_s13, 1024  }
  0x3f   : > { %762 = vsyncadd (%p978_p12), %s164_s13, 4294966272  ;;  %p500_p0 = scmp.ne.s32.totalorder %s858_s26, 0 }
  0x40   : > { %s801_s12 = smov (!%p500_p0), [#allocation2]  }
  0x41   : > { %189 = sbr.rel (%p500_p0) target bundleno = 235 (0xeb), region = 40  ;;  %s197_s14 = sshll.u32 (!%p500_p0), %s801_s12, 4  ;;  %s198_s14 = int_to_ptr.vmem [resolvable:$true] %s197_s14 }
  0x42   : > { %s693_s25 = scalar_lea.vmem (!%p500_p0), %s198_s14, 640  ;;  %p698_p6 = scmp.lt.s32.totalorder (!%p500_p0), %s198_s14, %s198_s14 }
  0x43   : > { %p694_p13 = scmp.ne.s32.totalorder (!%p500_p0), %s198_s14, %s693_s25  ;;  %p699_p7 = scmp.lt.s32.totalorder (!%p500_p0), %s693_s25, %s693_s25 }
  0x45   : > { %p700_p8 = por (!%p500_p0), %p699_p7, %p698_p6 }
  0x47   : > { %p701_p9 = pnand %p700_p8, %p694_p13 }
  0x49   : > { %704 = shalt.err (!%p701_p9)  }
  0x4a   : > { %200 = dma.hbm_to_vmem [thread:$0]  %s969_s1, 640, %s198_s14, [#allocation5] }
  0x4b   : > { %763 = dma.done.wait [#allocation5], 640 }
  0x4c   : > { %764 = vsyncadd [#allocation5], 4294966656  ;;  %s785_s6 = smov 0  }
  0x4d LB: >> { %v789_v0 = vmov 0.0   ;;  %s793_s18 = smov 0   ;;  %s787_s6 = sphi %s785_s6, %s209_s6  }
  0x4e LB: >>> { %s217_s19 = sshra.s32 %s795_s18, 7  ;;  %s222_s20 = sand.u32 127, %s795_s18  ;;  %s795_s18 = sphi %s793_s18, %s215_s18   ;;  %v791_v0 = vphi %v789_v0, %v790_v0  }
  0x4f   : >>> { %s219_s21 = sadd.s32 %s787_s6, %s217_s19  ;;  %s215_s18 = sadd.s32 1, %s795_s18  }
  0x50   : >>> { %s501_s22 = sshll.u32 %s219_s21, 7  ;;  %p212_p10 = scmp.ge.s32.totalorder %s215_s18, 8  }
  0x51   : >>> { %s223_s23 = sadd.s32 %s501_s22, %s222_s20  ;;  %s228_s7 = scalar_lea.vmem (%p212_p10), [#allocation3], %s787_s6 }
  0x52   : >>> { %s224_s28 = sld [smem:[#allocation7 + %s223_s23]]  ;;  %s209_s6 = sadd.s32 (%p212_p10), 1, %s787_s6  }
  0x53   : >> { %p206_p11 = scmp.ge.s32.totalorder (%p212_p10), %s209_s6, 8  }
  0x58   : >>> { %s225_s29 = scalar_lea.vmem [#allocation2], %s224_s28  ;;  %214 = sbr.rel (!%p212_p10) target bundleno = 78 (0x4e), region = 97 }
  0x59   : >>> { %v226_v1 = vld [vmem:[%s225_s29] sm:$0x1] }
  0x5a   : >>> { %v227_v2 = vadd.f32 %v791_v0, %v226_v1  }
  0x5c   : >>> { %v790_v0 = vmov %v227_v2   ;;  %229 = vst [vmem:[%s228_s7] sm:$0x1] (%p212_p10), %v227_v2 }
  0x5d   : > { %208 = sbr.rel (!%p206_p11) target bundleno = 77 (0x4d), region = 108  ;;  %v230_v3 = vld [vmem:[%s970_s2] sm:$0xff] (%p206_p11)  ;;  %v802_v4 = vmov (%p206_p11), 0  }
  0x5e   : > { %632 = vset.pattern.permute.xlu0 (%p206_p11), %v802_v4  ;;  %633 = vrcp.f32 (%p206_p11), %v230_v3 }
  0x63   : > { %v232_v6 = vld [vmem:[#allocation3] sm:$0xff] }
  0x6b   : > { %v634_v5 = vpop.eup %633 }
  0x6c   : > { %235 = vperm.xlu0 %632, %v634_v5  }
  0xe7   : > { %v236_v7 = vpop.permute.xlu0 %235 }
  0xe8   : > { %v238_v8 = vmul.f32 %v236_v7, %v232_v6 }
  0xea   : > { %239 = vst [vmem:[#allocation3] sm:$0xff] %v238_v8  ;;  %240 = vst [vmem:[#allocation4] sm:$0xff] %v238_v8 }
  0xeb PF: > { %v635_v9 = vld [vmem:[%s918_s17 + $0x38] sm:$0xff]   ;;  %v803_v10 = vmov 0.0   ;;  %v636_v11 = vld [vmem:[%s918_s17 + $0x30] sm:$0xff]   ;;  %vm804_vm0 = vmmov 0   ;;  %v637_v12 = vld [vmem:[%s918_s17 + $0x28] sm:$0xff]   ;;  %vm353_vm1 = vcmask 1043456  }
  0xec   : > { %529 = vmatprep.subr.bf16.mxu0 %v803_v10  ;;  %549 = vmatprep.subr.bf16.mxu1 %v803_v10  ;;  %v638_v13 = vld [vmem:[%s918_s17 + $0x20] sm:$0xff]   ;;  %v639_v14 = vld [vmem:[%s918_s17 + $0x18] sm:$0xff]   ;;  %v640_v15 = vld [vmem:[%s918_s17 + $0x10] sm:$0xff]   ;;  %vm349_vm2 = vcmask 64512   ;;  %p511_p1 = scmp.ne.s32.totalorder %s858_s26, 1 }
  0xed   : > { %530 = vmatpush3.bf16.msra.mxu0 %v635_v9  ;;  %545 = vmatprep.mubr.msk.bf16.mxu0 %vm804_vm0, %v803_v10  ;;  %v641_v16 = vld [vmem:[%s918_s17 + $0x8] sm:$0xff]   ;;  %v642_v17 = vld [vmem:[%s918_s17] sm:$0xff]  }
  0xee   : > { %531 = vmatprep.subr.bf16.mxu0 %v803_v10  ;;  %551 = vmatprep.mubr.msk.bf16.mxu1 %vm804_vm0, %v803_v10  ;;  %v347_v25 = vld [vmem:[%s971_s3] sm:$0xf] }
  0xf1   : > { %532 = vmatpush3.bf16.msra.mxu0 %v636_v11  ;;  %v257_v18 = vld [vmem:[#allocation3] sm:$0xff]  ;;  %v403_v35 = vld [vmem:[#allocation4] sm:$0xff] }
  0xf2   : > { %533 = vmatprep.subr.bf16.mxu0 %v803_v10  ;;  %v258_v19 = vpack.c.bf16 %v257_v18, %v257_v18 }
  0xf5   : > { %534 = vmatpush3.bf16.msra.mxu0 %v637_v12 }
  0xf6   : > { %535 = vmatprep.subr.bf16.mxu0 %v803_v10 }
  0xf9   : > { %536 = vmatpush3.bf16.msra.mxu0 %v638_v13 }
  0xfa   : > { %537 = vmatprep.subr.bf16.mxu0 %v803_v10 }
  0xfd   : > { %538 = vmatpush3.bf16.msra.mxu0 %v639_v14 }
  0xfe   : > { %539 = vmatprep.subr.bf16.mxu0 %v803_v10 }
 0x101   : > { %540 = vmatpush3.bf16.msra.mxu0 %v640_v15 }
 0x102   : > { %541 = vmatprep.subr.bf16.mxu0 %v803_v10 }
 0x105   : > { %542 = vmatpush3.bf16.msra.mxu0 %v641_v16 }
 0x106   : > { %543 = vmatprep.subr.bf16.mxu0 %v803_v10 }
 0x109   : > { %544 = vmatpush3.bf16.msra.mxu0 %v642_v17 }
 0x10c   : > { %546 = vmatmul.mubr.bf16.vlgmr.msra.gmra.mxu0 %v258_v19 }
 0x1cc   : > { %v341_v20 = vpop.f32.mrf.mxu0 }
 0x1cd   : > { %v348_v21 = vpack.c.bf16 %v341_v20, %v341_v20 }
 0x1ce   : > { %v547_v22 = vpop.f32.mrf.mxu0 }
 0x1cf   : > { %v355_v23 = vsel %vm353_vm1, %v348_v21, 0 }
 0x1d0   : > { %v344_v24 = vpop.f32.mrf.mxu0  ;;  %550 = vmatpush3.bf16.msra.mxu1 %v355_v23 }
 0x1d2   : > { %v548_v26 = vpop.f32.mrf.mxu0 }
 0x1d3   : > { %552 = vmatmul.mubr.msk.bf16.vlgmr.msra.gmra.mxu1 %vm349_vm2, %v347_v25 }
 0x293   : > { %v391_v27 = vpop.f32.mrf.mxu1 }
 0x294   : > { %397 = vst [vmem:[#allocation3] sm:$0xff] %v391_v27  ;;  %v398_v28 = vmul.f32 %v391_v27, %v391_v27 }
 0x295   : > { %v553_v29 = vpop.f32.mrf.mxu1 }
 0x296   : > { %399 = vadd.xlane.f32.xlu0 %v398_v28 }
 0x297   : > { %v394_v30 = vpop.f32.mrf.mxu1 }
 0x299   : > { %v554_v31 = vpop.f32.mrf.mxu1 }
 0x31f   : > { %v400_v32 = vpop.xlane.xlu0 %399 }
 0x320   : > { %v401_v33 = vmax.f32 %v400_v32, 1e-24 }
 0x322   : > { %643 = vrsqrt.f32 %v401_v33 }
 0x32f   : > { %v644_v34 = vpop.eup %643 }
 0x330   : > { %v404_v36 = vmul.f32 %v644_v34, %v391_v27  ;;  %410 = sbr.rel (%p511_p1) target bundleno = 831 (0x33f), region = 62 }
 0x332   : > { %v405_v37 = vadd.f32 %v404_v36, %v403_v35 }
 0x334   : > { %406 = vst [vmem:[#allocation4] sm:$0xff] %v405_v37 }
 0x33b   : > { %v411_v38 = vld [vmem:[#allocation4] sm:$0xff] }
 0x33c   : > { %v412_v39 = vmul.f32 0.33333334, %v411_v38 }
 0x33e   : > { %413 = vst [vmem:[#allocation11] sm:$0xff] %v412_v39 }
 0x33f PF: > { %p566_p3 = scmp.eq.s32.totalorder %s858_s26, 1  ;;  %s805_s13 = smov [#allocation11]  }
 0x340   : > { %s421_s17 = sshll.u32 %s805_s13, 4  ;;  %s422_s17 = int_to_ptr.vmem [resolvable:$true] %s421_s17 }
 0x341   : > { %s705_s12 = scalar_lea.vmem %s422_s17, 128  ;;  %p712_p12 = scmp.lt.s32.totalorder %s422_s17, %s422_s17 }
 0x342   : > { %p706_p2 = scmp.ne.s32.totalorder %s422_s17, %s705_s12  ;;  %p713_p0 = scmp.lt.s32.totalorder %s705_s12, %s705_s12 }
 0x344   : > { %p707_p4 = pnand %p706_p2, %p566_p3  ;;  %p714_p13 = por %p713_p0, %p712_p12 }
 0x346   : > { %p708_p5 = pneg %p707_p4 }
 0x348   : > { %p715_p6 = pnand %p714_p13, %p708_p5 }
 0x34a   : > { %718 = shalt.err (!%p715_p6)
}
 0x34b   : > { %558 = dma.vmem_to_hbm [thread:$0]  (%p566_p3), %s422_s17, 128, %s973_s5, [#allocation10]  }
 0x34c   : > { %766 = dma.done.wait (%p566_p3), [#allocation10], 128  }
 0x34d   : > { %768 = vsyncadd (%p566_p3), [#allocation10], 4294967168 }
 0x34e PF: > { %p22_p7 = scmp.ge.s32.totalorder %s861_s27, 4   ;;  %s979_s23 = smov %s775_s24 }
 0x34f   : > { %s980_s24 = smov %s779_s0  ;;  %s981_s0 = smov %s871_s30 }
 0x350   : > { %s982_s25 = smov %s861_s27  ;;  %24 = sbr.rel (!%p22_p7) target bundleno = 19 (0x13), region = 119 }
 0x355   :  { %434 = vsyncpa [#allocation9], 1 }
 0x356   :  { %436 = vsyncpa [#allocation9 + $0x1], 1 }
 0x357   :  { %437 = vsyncpa [#allocation10], 1 }
 0x358   :  { %439 = vsyncpa [#allocation10 + $0x1], 1 }
 0x359   :  { %440 = vsyncmov [#allocation5] }
 0x35c   :  { %s441_s26 = vpop.sfrf %440 }
 0x35d   :  { %p516_p8 = scmp.ne.s32.totalorder %s441_s26, 0 }
 0x35f   :  { %445 = shalt.err (%p516_p8)  }

</bundles_post_ra>
